<compile_context>
chip_gen: v7x
topology: tpu7x:2x2x1
jax: 0.10.0
libtpu: 0.0.40
codegen_flags: <defaults>
</compile_context>

<pallas_src>
import functools
import math

import jax
import jax.numpy as jnp
from jax import lax
from jax.experimental import pallas as pl
from jax.experimental.pallas import tpu as pltpu


# ----------------------------------------------------------------------------
# Small helpers
# ----------------------------------------------------------------------------
def _round_up(n, m):
    return ((n + m - 1) // m) * m


def _pick_tile(n, pref):
    """Largest tile <= pref that is a multiple of 128 and divides n; else the
    full axis (always a legal block)."""
    if n <= pref:
        return n
    t = (pref // 128) * 128
    while t >= 128:
        if n % t == 0:
            return t
        t -= 128
    return n


def _vmem_limit_bytes():
    """Generation-aware scoped VMEM limit: ~3/4 of physical, capped at 100 MiB
    (≈96 MiB on v5e/v6e's 128 MiB, ≈48 MiB on v7x's 64 MiB)."""
    try:
        cap = int(pltpu.get_tpu_info().vmem_capacity_bytes)
    except Exception:
        cap = 64 * 1024 * 1024
    return max(32 * 1024 * 1024, min(cap * 3 // 4, 100 * 1024 * 1024))


def _bf16_eup_supported():
    """bf16 EUP/VPU exists on v6e / v7x; v5e and older have no bf16 exp path."""
    try:
        kind = jax.devices()[0].device_kind.lower()
    except Exception:
        return False
    return not any(v in kind for v in ("v2", "v3", "v4", "v5"))


# ----------------------------------------------------------------------------
# Kernel 1: QKV 1x1-conv projections over spatial tiles (stacked K/V weights)
# ----------------------------------------------------------------------------
def _qkv_proj_kernel(x1_ref, x2_ref, wq_ref, bq_ref, wkv_ref, bkv_ref,
                     q_ref, k_ref, v_ref):
    C = wq_ref.shape[0]
    x1 = x1_ref[0].astype(jnp.bfloat16)             # (C, ts)
    x2 = x2_ref[0].astype(jnp.bfloat16)             # (C, ts)

    # Weights are pre-cast to bf16 in the wrapper (resident blocks, no re-cast).
    q = jnp.dot(wq_ref[...], x1, preferred_element_type=jnp.float32) + bq_ref[...]
    kv = jnp.dot(wkv_ref[...], x2, preferred_element_type=jnp.float32) + bkv_ref[...]

    q_ref[0] = q.astype(jnp.bfloat16)
    k_ref[0] = kv[:C, :].astype(jnp.bfloat16)
    v_ref[0] = kv[C:, :].astype(jnp.bfloat16)


# ----------------------------------------------------------------------------
# Kernel 2: flash-style multi-head cross attention with online softmax
#   grid = (B, num_heads, n_q, n_kv); kv axis is the (innermost) reduction.
# ----------------------------------------------------------------------------
def _flash_attn_kernel(scale_ref, q_ref, k_ref, v_ref, o_ref,
                       qb_sc, m_sc, l_sc, acc_sc, *, hw, mask_kv, exp_dtype):
    h = pl.program_id(1)
    ki = pl.program_id(3)

    @pl.when(ki == 0)
    def _():
        hd = q_ref.shape[1]
        # Fold 1/sqrt(hd) and the learnable per-head scale (SMEM) into q once
        # per q tile; reused across all kv steps.
        qs = q_ref[0] * (scale_ref[h] * (1.0 / math.sqrt(hd)))   # f32 (hd, tq)
        qb_sc[...] = qs.astype(jnp.bfloat16)
        m_sc[...] = jnp.full(m_sc.shape, -jnp.inf, m_sc.dtype)
        l_sc[...] = jnp.zeros(l_sc.shape, l_sc.dtype)
        acc_sc[...] = jnp.zeros(acc_sc.shape, acc_sc.dtype)

    kb = k_ref[0]                                                # (hd, tk) bf16
    # scores[s, t] = sum_d q[d, s] * k[d, t]  -> (tq, tk), f32 accumulation
    s = lax.dot_general(qb_sc[...], kb, (((0,), (0,)), ((), ())),
                        preferred_element_type=jnp.float32)

    m_prev = m_sc[...]
    m_new = jnp.maximum(m_prev, jnp.max(s, axis=-1, keepdims=True))
    alpha = jnp.exp(m_prev - m_new)
    # bf16 exponent on v6e/v7x (EUP-bound for small head_dim), f32 on v5e.
    p = jnp.exp((s - m_new).astype(exp_dtype))                   # unnormalized
    if mask_kv:
        tk = s.shape[-1]
        kv_idx = ki * tk + lax.broadcasted_iota(jnp.int32, s.shape, 1)
        p = p * (kv_idx < hw).astype(p.dtype)                    # zero padded cols
    l_sc[...] = alpha * l_sc[...] + jnp.sum(p.astype(jnp.float32),
                                            axis=-1, keepdims=True)

    vb = v_ref[0]                                                # (hd, tk) bf16
    # ctx_tile[s, d] = sum_t p[s, t] * v[d, t]  -> (tq, hd)
    pv = lax.dot_general(p.astype(jnp.bfloat16), vb, (((1,), (1,)), ((), ())),
                         preferred_element_type=jnp.float32)
    acc_sc[...] = alpha * acc_sc[...] + pv
    m_sc[...] = m_new

    @pl.when(ki == pl.num_programs(3) - 1)
    def _():
        # Single deferred normalization (EUP reciprocal, approx); bf16 output.
        o_ref[0, 0] = (acc_sc[...] *
                       pl.reciprocal(l_sc[...], approx=True)).astype(o_ref.dtype)


# ----------------------------------------------------------------------------
# Kernel 3a: channel-attention vector (avg-pool -> conv -> ReLU -> conv -> sigmoid)
#   grid = (B, n_pool_tiles); spatial axis is a reduction (accumulated sum).
# ----------------------------------------------------------------------------
def _channel_att_kernel(x1_ref, wc1_ref, bc1_ref, wc2_ref, bc2_ref, att_ref,
                        sum_sc, *, hw):
    p = pl.program_id(1)

    @pl.when(p == 0)
    def _():
        sum_sc[...] = jnp.zeros(sum_sc.shape, sum_sc.dtype)

    sum_sc[...] += jnp.sum(x1_ref[0], axis=-1, keepdims=True)    # (C, 1)

    @pl.when(p == pl.num_programs(1) - 1)
    def _():
        pooled = sum_sc[...] * (1.0 / hw)        # true-HW mean (padding is zeros)
        hid = jnp.dot(wc1_ref[...], pooled,
                      preferred_element_type=jnp.float32) + bc1_ref[...]
        hid = jnp.maximum(hid, 0.0)              # ReLU
        att = jnp.dot(wc2_ref[...], hid,
                      preferred_element_type=jnp.float32) + bc2_ref[...]
        att_ref[0] = jax.nn.sigmoid(att)         # (C, 1)


# ----------------------------------------------------------------------------
# Kernel 3b: gate + residual on lane-dense spatial tiles
# ----------------------------------------------------------------------------
def _gate_kernel(ctx_ref, x1_ref, att_ref, o_ref):
    o_ref[0] = ctx_ref[0].astype(jnp.float32) * att_ref[0] + x1_ref[0]


# ----------------------------------------------------------------------------
# Wrapper
# ----------------------------------------------------------------------------
def cross_attention_forward(x1, x2, params, num_heads=2):
    B, C, H, W = x1.shape
    HW = H * W
    assert C % num_heads == 0, "in_channels must be divisible by num_heads"
    hd = C // num_heads
    assert hd % 8 == 0, "head_dim must be a multiple of 8 (sublane tile)"
    C8 = C // 8

    # Pad the spatial axis to a multiple of 128 when it is neither 128-divisible
    # nor small enough to use full-axis blocks. Padded kv columns are masked in
    # the attention kernel; padded q rows / output columns are sliced off.
    HWp = HW if (HW % 128 == 0 or HW <= 128) else _round_up(HW, 128)

    x1f = x1.reshape(B, C, HW)
    x2f = x2.reshape(B, C, HW)
    if HWp != HW:
        pad = ((0, 0), (0, 0), (0, HWp - HW))
        x1f = jnp.pad(x1f, pad)
        x2f = jnp.pad(x2f, pad)

    vmem_limit = _vmem_limit_bytes()

    # Pre-cast matmul weights to bf16 once (resident VMEM blocks in the kernel).
    wq = params["wq"].astype(jnp.bfloat16)
    wkv = jnp.concatenate([params["wk"], params["wv"]], axis=0).astype(jnp.bfloat16)
    bq = params["bq"]
    bkv = jnp.concatenate([params["bk"], params["bv"]], axis=0)

    # ---- 1) QKV projections (bf16 q/k/v outputs) -----------------------------
    ts = _pick_tile(HWp, 1024)
    n_s = HWp // ts
    qkv_call = pl.pallas_call(
        _qkv_proj_kernel,
        out_shape=tuple(jax.ShapeDtypeStruct((B, C, HWp), jnp.bfloat16)
                        for _ in range(3)),
        grid=(B, n_s),
        in_specs=[
            pl.BlockSpec((1, C, ts), lambda b, s: (b, 0, s)),      # x1
            pl.BlockSpec((1, C, ts), lambda b, s: (b, 0, s)),      # x2
            pl.BlockSpec((C, C), lambda b, s: (0, 0)),             # wq (bf16)
            pl.BlockSpec((C, 1), lambda b, s: (0, 0)),             # bq
            pl.BlockSpec((2 * C, C), lambda b, s: (0, 0)),         # wkv (bf16)
            pl.BlockSpec((2 * C, 1), lambda b, s: (0, 0)),         # bkv
        ],
        out_specs=tuple(pl.BlockSpec((1, C, ts), lambda b, s: (b, 0, s))
                        for _ in range(3)),
        compiler_params=pltpu.CompilerParams(
            dimension_semantics=("parallel", "parallel"),
            vmem_limit_bytes=vmem_limit),
    )
    q, k, v = qkv_call(x1f, x2f, wq, bq, wkv, bkv)

    # ---- 2) flash multi-head cross attention ---------------------------------
    tq = _pick_tile(HWp, 512)
    # Keep K/V resident across q tiles (constant kv block index) when the
    # (tq, tk) score intermediate plus the per-head K/V blocks stay small;
    # otherwise stream kv in large lane-dense chunks.
    if HWp * (tq * 6 + 4 * hd) <= 12 * 1024 * 1024:
        tk = HWp
    else:
        tk = _pick_tile(HWp, 2048)
    n_q = HWp // tq
    n_kv = HWp // tk

    attn_kernel = functools.partial(
        _flash_attn_kernel,
        hw=HW,
        mask_kv=(HWp != HW),
        exp_dtype=jnp.bfloat16 if _bf16_eup_supported() else jnp.float32)
    attn_call = pl.pallas_call(
        attn_kernel,
        out_shape=jax.ShapeDtypeStruct((B, num_heads, HWp, hd), jnp.bfloat16),
        grid=(B, num_heads, n_q, n_kv),
        in_specs=[
            pl.BlockSpec(memory_space=pltpu.MemorySpace.SMEM),     # scale (nh,)
            pl.BlockSpec((1, hd, tq), lambda b, h, qi, ki: (b, h, qi)),   # q
            pl.BlockSpec((1, hd, tk), lambda b, h, qi, ki: (b, h, ki)),   # k
            pl.BlockSpec((1, hd, tk), lambda b, h, qi, ki: (b, h, ki)),   # v
        ],
        out_specs=pl.BlockSpec((1, 1, tq, hd), lambda b, h, qi, ki: (b, h, qi, 0)),
        scratch_shapes=[
            pltpu.VMEM((hd, tq), jnp.bfloat16),  # scaled q (hoisted out of kv loop)
            pltpu.VMEM((tq, 1), jnp.float32),    # running max m
            pltpu.VMEM((tq, 1), jnp.float32),    # running sum l
            pltpu.VMEM((tq, hd), jnp.float32),   # unnormalized context acc
        ],
        compiler_params=pltpu.CompilerParams(
            dimension_semantics=("parallel", "parallel", "parallel", "arbitrary"),
            vmem_limit_bytes=vmem_limit),
    )
    ctx = attn_call(params["scale"], q, k, v)        # (B, nh, HWp, hd) bf16

    # torch: context.view(B, C, H, W) -- raw contiguous reinterpretation (free
    # reshape); padded q rows must be removed before the view, then re-pad the
    # lane axis for the tiled combine kernels.
    if HWp != HW:
        ctx = ctx[:, :, :HW, :]
    ctx_view = ctx.reshape(B, C, HW)
    if HWp != HW:
        ctx_view = jnp.pad(ctx_view, ((0, 0), (0, 0), (0, HWp - HW)))

    # ---- 3a) channel-attention gate vector -----------------------------------
    tp = _pick_tile(HWp, 2048)
    n_p = HWp // tp
    ca_kernel = functools.partial(_channel_att_kernel, hw=HW)
    ca_call = pl.pallas_call(
        ca_kernel,
        out_shape=jax.ShapeDtypeStruct((B, C, 1), jnp.float32),
        grid=(B, n_p),
        in_specs=[
            pl.BlockSpec((1, C, tp), lambda b, p: (b, 0, p)),      # x1 tile
            pl.BlockSpec((C8, C), lambda b, p: (0, 0)),            # wc1
            pl.BlockSpec((C8, 1), lambda b, p: (0, 0)),            # bc1
            pl.BlockSpec((C, C8), lambda b, p: (0, 0)),            # wc2
            pl.BlockSpec((C, 1), lambda b, p: (0, 0)),             # bc2
        ],
        out_specs=pl.BlockSpec((1, C, 1), lambda b, p: (b, 0, 0)),
        scratch_shapes=[pltpu.VMEM((C, 1), jnp.float32)],
        compiler_params=pltpu.CompilerParams(
            dimension_semantics=("parallel", "arbitrary"),
            vmem_limit_bytes=vmem_limit),
    )
    att = ca_call(x1f, params["wc1"], params["bc1"], params["wc2"], params["bc2"])

    # ---- 3b) gate + residual on lane-dense tiles ------------------------------
    tg = _pick_tile(HWp, 2048)
    n_g = HWp // tg
    gate_call = pl.pallas_call(
        _gate_kernel,
        out_shape=jax.ShapeDtypeStruct((B, C, HWp), jnp.float32),
        grid=(B, n_g),
        in_specs=[
            pl.BlockSpec((1, C, tg), lambda b, g: (b, 0, g)),      # ctx (bf16)
            pl.BlockSpec((1, C, tg), lambda b, g: (b, 0, g)),      # x1
            pl.BlockSpec((1, C, 1), lambda b, g: (b, 0, 0)),       # att (resident)
        ],
        out_specs=pl.BlockSpec((1, C, tg), lambda b, g: (b, 0, g)),
        compiler_params=pltpu.CompilerParams(
            dimension_semantics=("parallel", "parallel"),
            vmem_limit_bytes=vmem_limit),
    )
    out = gate_call(ctx_view, x1f, att)

    if HWp != HW:
        out = out[:, :, :HW]
    return out.reshape(B, C, H, W)


# ----------------------------------------------------------------------------
# Deterministic parameter init (matches shapes / init scheme of the nn.Module)
# ----------------------------------------------------------------------------
def init_params(key, C, num_heads):
    C8 = C // 8
    ks = jax.random.split(key, 5)
    # kaiming_normal_(fan_out, relu) for a 1x1 conv: std = sqrt(2 / out_channels)
    wq = jax.random.normal(ks[0], (C, C), jnp.float32) * math.sqrt(2.0 / C)
    wk = jax.random.normal(ks[1], (C, C), jnp.float32) * math.sqrt(2.0 / C)
    wv = jax.random.normal(ks[2], (C, C), jnp.float32) * math.sqrt(2.0 / C)
    wc1 = jax.random.normal(ks[3], (C8, C), jnp.float32) * math.sqrt(2.0 / C8)
    wc2 = jax.random.normal(ks[4], (C, C8), jnp.float32) * math.sqrt(2.0 / C)
    return dict(
        wq=wq, bq=jnp.zeros((C, 1), jnp.float32),
        wk=wk, bk=jnp.zeros((C, 1), jnp.float32),
        wv=wv, bv=jnp.zeros((C, 1), jnp.float32),
        scale=jnp.ones((num_heads,), jnp.float32),
        wc1=wc1, bc1=jnp.zeros((C8, 1), jnp.float32),
        wc2=wc2, bc2=jnp.zeros((C, 1), jnp.float32),
    )


# ----------------------------------------------------------------------------
# Pure-JAX f32 reference (mirrors the PyTorch forward exactly)
# ----------------------------------------------------------------------------
def reference(x1, x2, params, num_heads):
    B, C, H, W = x1.shape
    HW = H * W
    HD = C // num_heads
    x1f = x1.reshape(B, C, HW)
    x2f = x2.reshape(B, C, HW)
    q = jnp.einsum('oc,bcp->bop', params["wq"], x1f) + params["bq"][None]
    k = jnp.einsum('oc,bcp->bop', params["wk"], x2f) + params["bk"][None]
    v = jnp.einsum('oc,bcp->bop', params["wv"], x2f) + params["bv"][None]
    qf = q.reshape(B, num_heads, HD, HW)
    kf = k.reshape(B, num_heads, HD, HW)
    vf = v.reshape(B, num_heads, HD, HW)
    scores = jnp.einsum('bhds,bhdt->bhst', qf, kf) / math.sqrt(HD)
    scores = scores * params["scale"].reshape(1, num_heads, 1, 1)
    w = jax.nn.softmax(scores, axis=-1)
    ctx = jnp.einsum('bhst,bhdt->bhsd', w, vf)           # (B, nh, HW, hd)
    ctx = ctx.reshape(B, C, H, W)                        # torch .view semantics
    pooled = jnp.mean(x1f, axis=-1, keepdims=True)       # (B, C, 1)
    hid = jnp.maximum(
        jnp.einsum('oc,bcx->box', params["wc1"], pooled) + params["bc1"][None], 0.0)
    att = jax.nn.sigmoid(
        jnp.einsum('oc,bcx->box', params["wc2"], hid) + params["bc2"][None])
    return ctx * att[:, :, :, None] + x1


if __name__ == "__main__":
    B, C, H, W = 2, 32, 8, 8
    num_heads = 2

    key = jax.random.PRNGKey(0)
    k1, k2, kp = jax.random.split(key, 3)
    x1 = jax.random.normal(k1, (B, C, H, W), jnp.float32)
    x2 = jax.random.normal(k2, (B, C, H, W), jnp.float32)
    params = init_params(kp, C, num_heads)

    out = cross_attention_forward(x1, x2, params, num_heads)
    out = jax.block_until_ready(out)

    ref = reference(x1, x2, params, num_heads)
    assert out.shape == (B, C, H, W)
    # bf16 q/k/v/ctx storage, bf16 MXU operands, bf16 exp (v6e/v7x) and approx
    # reciprocal -> compare to the f32 reference with a loose tolerance.
    max_err = float(jnp.max(jnp.abs(out - ref)))
    assert jnp.allclose(out, ref, atol=1e-1, rtol=1e-1), max_err

    print("KERNEL_OK")
</pallas_src>

<mosaic_0001>
module attributes {stable_mosaic.version = 11 : i64} {
  func.func @_qkv_proj_kernel(%arg0: i32, %arg1: i32, %arg2: memref<1x32x64xf32, #tpu.memory_space<vmem>>, %arg3: memref<1x32x64xf32, #tpu.memory_space<vmem>>, %arg4: memref<32x32xbf16, #tpu.memory_space<vmem>>, %arg5: memref<32x1xf32, #tpu.memory_space<vmem>>, %arg6: memref<64x32xbf16, #tpu.memory_space<vmem>>, %arg7: memref<64x1xf32, #tpu.memory_space<vmem>>, %arg8: memref<1x32x64xbf16, #tpu.memory_space<vmem>>, %arg9: memref<1x32x64xbf16, #tpu.memory_space<vmem>>, %arg10: memref<1x32x64xbf16, #tpu.memory_space<vmem>>) attributes {dimension_semantics = [#tpu.dimension_semantics<parallel>, #tpu.dimension_semantics<parallel>], iteration_bounds = array<i64: 2, 1>, scalar_prefetch = 0 : i64, scratch_operands = 0 : i64, tpu.core_type = #tpu.core_type<tc>, window_params = [{transform_indices = @transform_0, window_bounds = array<i64: 1, 32, 64>}, {transform_indices = @transform_1, window_bounds = array<i64: 1, 32, 64>}, {pipeline_mode = #tpu.pipeline_mode<synchronous>, transform_indices = @transform_2, window_bounds = array<i64: 32, 32>}, {pipeline_mode = #tpu.pipeline_mode<synchronous>, transform_indices = @transform_3, window_bounds = array<i64: 32, 1>}, {pipeline_mode = #tpu.pipeline_mode<synchronous>, transform_indices = @transform_4, window_bounds = array<i64: 64, 32>}, {pipeline_mode = #tpu.pipeline_mode<synchronous>, transform_indices = @transform_5, window_bounds = array<i64: 64, 1>}, {transform_indices = @transform_6, window_bounds = array<i64: 1, 32, 64>}, {transform_indices = @transform_7, window_bounds = array<i64: 1, 32, 64>}, {transform_indices = @transform_8, window_bounds = array<i64: 1, 32, 64>}]} {
    %c0 = arith.constant 0 : index
    %c0_0 = arith.constant 0 : index
    %c0_1 = arith.constant 0 : index
    %0 = vector.load %arg2[%c0, %c0_0, %c0_1] : memref<1x32x64xf32, #tpu.memory_space<vmem>>, vector<1x32x64xf32>
    %1 = vector.shape_cast %0 : vector<1x32x64xf32> to vector<32x64xf32>
    %2 = arith.truncf %1 : vector<32x64xf32> to vector<32x64xbf16>
    %c0_2 = arith.constant 0 : index
    %c0_3 = arith.constant 0 : index
    %c0_4 = arith.constant 0 : index
    %3 = vector.load %arg3[%c0_2, %c0_3, %c0_4] : memref<1x32x64xf32, #tpu.memory_space<vmem>>, vector<1x32x64xf32>
    %4 = vector.shape_cast %3 : vector<1x32x64xf32> to vector<32x64xf32>
    %5 = arith.truncf %4 : vector<32x64xf32> to vector<32x64xbf16>
    %c0_5 = arith.constant 0 : index
    %c0_6 = arith.constant 0 : index
    %6 = vector.load %arg4[%c0_5, %c0_6] : memref<32x32xbf16, #tpu.memory_space<vmem>>, vector<32x32xbf16>
    %cst = arith.constant dense<0.000000e+00> : vector<32x64xf32>
    %7 = tpu.matmul %6, %2, %cst {dimension_numbers = #tpu.dot_dimension_numbers<[1], [0], [0], [1], [0, 0, 1, 1], [], []>} : vector<32x32xbf16>, vector<32x64xbf16>, vector<32x64xf32> -> vector<32x64xf32>
    %c0_7 = arith.constant 0 : index
    %c0_8 = arith.constant 0 : index
    %8 = vector.load %arg5[%c0_7, %c0_8] : memref<32x1xf32, #tpu.memory_space<vmem>>, vector<32x1xf32>
    %9 = vector.broadcast %8 : vector<32x1xf32> to vector<32x64xf32>
    %10 = arith.addf %7, %9 : vector<32x64xf32>
    %c0_9 = arith.constant 0 : index
    %c0_10 = arith.constant 0 : index
    %11 = vector.load %arg6[%c0_9, %c0_10] : memref<64x32xbf16, #tpu.memory_space<vmem>>, vector<64x32xbf16>
    %cst_11 = arith.constant dense<0.000000e+00> : vector<64x64xf32>
    %12 = tpu.matmul %11, %5, %cst_11 {dimension_numbers = #tpu.dot_dimension_numbers<[1], [0], [0], [1], [0, 0, 1, 1], [], []>} : vector<64x32xbf16>, vector<32x64xbf16>, vector<64x64xf32> -> vector<64x64xf32>
    %c0_12 = arith.constant 0 : index
    %c0_13 = arith.constant 0 : index
    %13 = vector.load %arg7[%c0_12, %c0_13] : memref<64x1xf32, #tpu.memory_space<vmem>>, vector<64x1xf32>
    %14 = vector.broadcast %13 : vector<64x1xf32> to vector<64x64xf32>
    %15 = arith.addf %12, %14 : vector<64x64xf32>
    %16 = arith.truncf %10 : vector<32x64xf32> to vector<32x64xbf16>
    %c0_14 = arith.constant 0 : index
    %c0_15 = arith.constant 0 : index
    %c0_16 = arith.constant 0 : index
    %17 = vector.load %arg8[%c0_14, %c0_15, %c0_16] : memref<1x32x64xbf16, #tpu.memory_space<vmem>>, vector<1x32x64xbf16>
    %18 = vector.shape_cast %17 : vector<1x32x64xbf16> to vector<32x64xbf16>
    %19 = vector.shape_cast %16 : vector<32x64xbf16> to vector<1x32x64xbf16>
    tpu.vector_store %arg8[%c0_14, %c0_15, %c0_16], %19 {strides = array<i32>} : memref<1x32x64xbf16, #tpu.memory_space<vmem>>, vector<1x32x64xbf16>,
    %20 = vector.extract_strided_slice %15 {offsets = [0, 0], sizes = [32, 64], strides = [1, 1]} : vector<64x64xf32> to vector<32x64xf32>
    %21 = arith.truncf %20 : vector<32x64xf32> to vector<32x64xbf16>
    %c0_17 = arith.constant 0 : index
    %c0_18 = arith.constant 0 : index
    %c0_19 = arith.constant 0 : index
    %22 = vector.load %arg9[%c0_17, %c0_18, %c0_19] : memref<1x32x64xbf16, #tpu.memory_space<vmem>>, vector<1x32x64xbf16>
    %23 = vector.shape_cast %22 : vector<1x32x64xbf16> to vector<32x64xbf16>
    %24 = vector.shape_cast %21 : vector<32x64xbf16> to vector<1x32x64xbf16>
    tpu.vector_store %arg9[%c0_17, %c0_18, %c0_19], %24 {strides = array<i32>} : memref<1x32x64xbf16, #tpu.memory_space<vmem>>, vector<1x32x64xbf16>,
    %25 = vector.extract_strided_slice %15 {offsets = [32, 0], sizes = [32, 64], strides = [1, 1]} : vector<64x64xf32> to vector<32x64xf32>
    %26 = arith.truncf %25 : vector<32x64xf32> to vector<32x64xbf16>
    %c0_20 = arith.constant 0 : index
    %c0_21 = arith.constant 0 : index
    %c0_22 = arith.constant 0 : index
    %27 = vector.load %arg10[%c0_20, %c0_21, %c0_22] : memref<1x32x64xbf16, #tpu.memory_space<vmem>>, vector<1x32x64xbf16>
    %28 = vector.shape_cast %27 : vector<1x32x64xbf16> to vector<32x64xbf16>
    %29 = vector.shape_cast %26 : vector<32x64xbf16> to vector<1x32x64xbf16>
    tpu.vector_store %arg10[%c0_20, %c0_21, %c0_22], %29 {strides = array<i32>} : memref<1x32x64xbf16, #tpu.memory_space<vmem>>, vector<1x32x64xbf16>,
    return
  }
  func.func @transform_0(%arg0: i32, %arg1: i32) -> (i32, i32, i32) {
    %c0_i32 = arith.constant 0 : i32
    %c0_i32_0 = arith.constant 0 : i32
    return %arg0, %c0_i32, %arg1 : i32, i32, i32
  }
  func.func @transform_1(%arg0: i32, %arg1: i32) -> (i32, i32, i32) {
    %c0_i32 = arith.constant 0 : i32
    %c0_i32_0 = arith.constant 0 : i32
    return %arg0, %c0_i32, %arg1 : i32, i32, i32
  }
  func.func @transform_2(%arg0: i32, %arg1: i32) -> (i32, i32) {
    %c0_i32 = arith.constant 0 : i32
    %c0_i32_0 = arith.constant 0 : i32
    %c0_i32_1 = arith.constant 0 : i32
    return %c0_i32, %c0_i32_0 : i32, i32
  }
  func.func @transform_3(%arg0: i32, %arg1: i32) -> (i32, i32) {
    %c0_i32 = arith.constant 0 : i32
    %c0_i32_0 = arith.constant 0 : i32
    %c0_i32_1 = arith.constant 0 : i32
    return %c0_i32, %c0_i32_0 : i32, i32
  }
  func.func @transform_4(%arg0: i32, %arg1: i32) -> (i32, i32) {
    %c0_i32 = arith.constant 0 : i32
    %c0_i32_0 = arith.constant 0 : i32
    %c0_i32_1 = arith.constant 0 : i32
    return %c0_i32, %c0_i32_0 : i32, i32
  }
  func.func @transform_5(%arg0: i32, %arg1: i32) -> (i32, i32) {
    %c0_i32 = arith.constant 0 : i32
    %c0_i32_0 = arith.constant 0 : i32
    %c0_i32_1 = arith.constant 0 : i32
    return %c0_i32, %c0_i32_0 : i32, i32
  }
  func.func @transform_6(%arg0: i32, %arg1: i32) -> (i32, i32, i32) {
    %c0_i32 = arith.constant 0 : i32
    %c0_i32_0 = arith.constant 0 : i32
    return %arg0, %c0_i32, %arg1 : i32, i32, i32
  }
  func.func @transform_7(%arg0: i32, %arg1: i32) -> (i32, i32, i32) {
    %c0_i32 = arith.constant 0 : i32
    %c0_i32_0 = arith.constant 0 : i32
    return %arg0, %c0_i32, %arg1 : i32, i32, i32
  }
  func.func @transform_8(%arg0: i32, %arg1: i32) -> (i32, i32, i32) {
    %c0_i32 = arith.constant 0 : i32
    %c0_i32_0 = arith.constant 0 : i32
    return %arg0, %c0_i32, %arg1 : i32, i32, i32
  }
}

</mosaic_0001>

<bundles_post_ra>
// kernel: tpu_custom_call.1
= control target key start
LH: loop header
LB: loop body
LE: loop exit
PB: predicated region body
PF: predicated region fallthrough
CT: control target
= control target key end

     0   :  { %s1693_s0 = inlined_call_operand.vmem [shape: f32[2,32,64], index: 0, kind: input, shape index: {}]   ;;  %s1694_s1 = inlined_call_operand.vmem [shape: f32[2,32,64], index: 1, kind: input, shape index: {}]   ;;  %s1695_s2 = inlined_call_operand.hbm [shape: bf16[32,32], index: 2, kind: input, shape index: {}]   ;;  %s1696_s3 = inlined_call_operand.vmem [shape: f32[32,1], index: 3, kind: input, shape index: {}]   ;;  %s1697_s4 = inlined_call_operand.vmem [shape: bf16[64,32], index: 4, kind: input, shape index: {}]   ;;  %s1698_s5 = inlined_call_operand.vmem [shape: f32[64,1], index: 5, kind: input, shape index: {}]   ;;  %s1699_s6 = inlined_call_operand.hbm [shape: bf16[2,32,64], index: 6, kind: output, shape index: {0}]   ;;  %s1700_s7 = inlined_call_operand.hbm [shape: bf16[2,32,64], index: 7, kind: output, shape index: {1}]   ;;  %s1701_s8 = inlined_call_operand.hbm [shape: bf16[2,32,64], index: 8, kind: output, shape index: {2}]  }
   0x1   :  { %1707 = sst [smem:[#allocation12_spill]] %s1693_s0 }
   0x2   :  { %1708 = sst [smem:[#allocation13_spill]] %s1694_s1 }
   0x3   :  { %1709 = sst [smem:[#allocation14_spill]] %s1695_s2 }
   0x4   :  { %14 = vsyncpa [#allocation3], 0 }
   0x5   :  { %15 = vsyncpa [#allocation4], 0 }
   0x6   :  { %17 = vsyncpa [#allocation4 + $0x1], 0 }
   0x7   :  { %18 = vsyncpa [#allocation7], 0 }
   0x8   :  { %20 = vsyncpa [#allocation7 + $0x1], 0  ;;  %s1361_s27 = smov 0   ;;  %s1363_s28 = smov 0  }
   0x9   :  { %s1365_s29 = smov 0   ;;  %s1367_s30 = smov 0  }
   0xa   :  { %s1369_s9 = smov 0   ;;  %s1371_s10 = smov 0  }
   0xb LB: > { %s1392_s11 = sadd.s32 4294967295, %s1305_s10   ;;  %s1702_s12 = sadd.s32 4294967294, %s1305_s10   ;;  %s1305_s10 = sphi %s1371_s10, %s26_s10   ;;  %s1301_s9 = sphi %s1369_s9, %s1729_s9   ;;  %s1297_s30 = sphi %s1367_s30, %s1728_s30   ;;  %s1293_s29 = sphi %s1365_s29, %s1727_s29   ;;  %s1289_s28 = sphi %s1363_s28, %s1726_s28   ;;  %s1285_s27 = sphi %s1361_s27, %s1725_s27  }
   0xc   : > { %s38_s13 = sadd.s32 1, %s1301_s9  ;;  %s187_s14 = sadd.s32 1, %s1293_s29 }
   0xd   : > { %p40_p0 = scmp.ge.s32.totalorder %s38_s13, 2  ;;  %p197_p1 = scmp.ne.s32.totalorder %s1293_s29, %s1289_s28 }
   0xe   : > { %p198_p2 = scmp.eq.s32.totalorder %s1392_s11, 1  ;;  %p203_p3 = scmp.ne.s32.totalorder %s1289_s28, %s1285_s27 }
   0xf   : > { %s1731_s13 = smov (%p40_p0, %s38_s13), 0  ;;  %p204_p5 = scmp.eq.s32.totalorder %s1702_s12, 1 }
  0x10   : > { %p1404_p4 = por %p198_p2, %p197_p1  ;;  %s182_s16 = ssub.s32 %s1301_s9, %s1731_s13 }
  0x11   : > { %p952_p6 = scmp.ge.s32.totalorder %s1305_s10, 1  ;;  %p185_p7 = scmp.eq.s32.totalorder %s182_s16, 0 }
  0x12   : > { %s1710_s15 = scalar_select %p1404_p4, 1, 0 }
  0x13   : > { %p1413_p8 = por %p204_p5, %p203_p3  ;;  %p267_p9 = scmp.lt.s32.totalorder %s1305_s10, 3 }
  0x14   : > { %s1419_s18 = scalar_select %p185_p7, %s1293_s29, %s187_s14  }
  0x15   : > { %s1711_s17 = scalar_select %p1413_p8, 1, 0 }
  0x16   : > { %p1421_p10 = pnand %p952_p6, %p267_p9  ;;  %p1703_p11 = scmp.eq.s32.totalorder %s1392_s11, 0 }
  0x17   : > { %s1307_s20 = smov [#allocation2]   ;;  %s1714_s2 = sld [smem:[#allocation14_spill]] }
  0x18   : > { %s1712_s19 = scalar_select %p1421_p10, 1, 0 }
  0x19   : > { %p1056_p12 = pneg %p1421_p10  ;;  %s279_s21 = sshll.u32 %s1307_s20, 4  ;;  %s280_s21 = int_to_ptr.vmem [resolvable:$true] %s279_s21 }
  0x1b   : > { %p1430_p13 = pnand %p1703_p11, %p1056_p12 }
  0x1d   : > { %s1135_s25 = scalar_lea.hbm %s1714_s2, 256  ;;  %p1137_p1 = pneg %p1430_p13 }
  0x1e   : > { %p1136_p0 = scmp.ne.s32.totalorder %s1714_s2, %s1135_s25  ;;  %p1142_p5 = scmp.lt.u32.totalorder %s1135_s25, %s1714_s2 }
  0x20   : > { %p1138_p2 = pnand %p1137_p1, %p1136_p0 }
  0x22   : > { %p1139_p3 = pneg %p1138_p2 }
  0x24   : > { %p1144_p6 = pnand %p1142_p5, %p1139_p3 }
  0x26   : > { %1147 = shalt.err (!%p1144_p6)
}
  0x27   : > { %s1148_s12 = scalar_lea.vmem %s280_s21, 256  ;;  %p1156_p11 = scmp.lt.s32.totalorder %s280_s21, %s280_s21 }
  0x28   : > { %p1149_p7 = scmp.ne.s32.totalorder %s280_s21, %s1148_s12  ;;  %p1157_p8 = scmp.lt.s32.totalorder %s1148_s12, %s1148_s12 }
  0x2a   : > { %p1151_p9 = pnand %p1149_p7, %p1137_p1  ;;  %p1158_p4 = por %p1157_p8, %p1156_p11 }
  0x2c   : > { %p1152_p12 = pneg %p1151_p9 }
  0x2e   : > { %p1159_p10 = pnand %p1158_p4, %p1152_p12 }
  0x30   : > { %1162 = shalt.err (!%p1159_p10)
}
  0x31   : > { %s1308_s23 = smov 64   ;;  %s1309_s24 = smov 4  }
  0x32   : > { %1059 = dma.hbm_to_vmem [thread:$0]  (!%p1430_p13), %s1714_s2, 256, %s280_s21, [#allocation3], %s1308_s23, %s1308_s23, %s1309_s24  }
  0x33   : > { %p1715_p0 = scmp.ne.s32.totalorder %s1712_s19, 0 }
  0x34   : > { %p1716_p2 = scmp.eq.s32.totalorder (!%p1715_p0), %s1392_s11, 0 }
  0x35   : > { %326 = sbr.rel (%p1715_p0) target bundleno = 362 (0x16a), region = 44 }
  0x3c   : > { %1272 = dma.done.wait (%p1716_p2), [#allocation3], 256   ;;  %p1717_p1 = pmov %p1716_p2 }
  0x3d   : > { %p381_p4 = scmp.lt.s32.totalorder %s1297_s30, 1  ;;  %v1310_v0 = vmov 0   ;;  %s1718_s0 = sld [smem:[#allocation12_spill]]  ;;  %v1129_v13 = vld [vmem:[#allocation2] sm:$0xff]   ;;  %vm448_vm0 = vcmask 261120   ;;  %v1131_v15 = vld [vmem:[#allocation2 + $0x8] sm:$0xff]  }
  0x3e   : > { %1274 = vsyncadd (%p1717_p1), [#allocation3], 4294967040  ;;  %1128 = vset.pattern.permute.xlu1 %v1310_v0  ;;  %1127 = vset.pattern.permute.xlu0 %v1310_v0  ;;  %s1719_s1 = sld [smem:[#allocation13_spill]]  ;;  %v1130_v14 = vld [vmem:[%s1697_s4] sm:$0xff]   ;;  %v1132_v16 = vld [vmem:[%s1697_s4 + $0x8] sm:$0xff]   ;;  %vm673_vm1 = vcmask 519168  }
  0x3f   : > { %s382_s12 = scalar_select %p381_p4, %s1297_s30, 1  ;;  %1030 = vmatprep.mubr.msk.bf16.mxu0 %vm448_vm0, %v1129_v13  ;;  %1038 = vmatprep.mubr.msk.bf16.mxu1 %vm448_vm0, %v1130_v14  ;;  %v514_v17 = vld [vmem:[%s1698_s5 + $0x10] sm:$0xff]  ;;  %v512_v19 = vld [vmem:[%s1698_s5] sm:$0xff]  ;;  %v515_v20 = vld [vmem:[%s1698_s5 + $0x18] sm:$0xff] }
  0x40   : > { %v1133_v18 = vld [vmem:[%s1697_s4 + $0x10] sm:$0xff]   ;;  %532 = vperm.xlu1 %1128, %v514_v17   ;;  %522 = vperm.xlu0 %1127, %v512_v19   ;;  %v513_v21 = vld [vmem:[%s1698_s5 + $0x8] sm:$0xff]  ;;  %v414_v23 = vld [vmem:[%s1696_s3] sm:$0xff]  ;;  %s1534_s25 = sshll.u32 %s1297_s30, 8  ;;  %s1720_s30 = sand.u32 1, %s1289_s28  }
  0x41   : > { %s999_s22 = sshll.u32 %s382_s12, 5  ;;  %v415_v22 = vld [vmem:[%s1696_s3 + $0x8] sm:$0xff]  ;;  %v1134_v24 = vld [vmem:[%s1697_s4 + $0x18] sm:$0xff]   ;;  %v416_v26 = vld [vmem:[%s1696_s3 + $0x10] sm:$0xff]  ;;  %s1553_s19 = scalar_lea.hbm %s1699_s6, %s1534_s25 }
  0x42   : > { %v417_v25 = vld [vmem:[%s1696_s3 + $0x18] sm:$0xff]  ;;  %v517_v27 = vld [vmem:[%s1698_s5 + $0x28] sm:$0xff]  ;;  %v516_v28 = vld [vmem:[%s1698_s5 + $0x20] sm:$0xff]  ;;  %p1721_p10 = scmp.ne.s32.totalorder %s1710_s15, 0  ;;  %s1311_s16 = smov [#allocation5]  }
  0x43   : > { %s388_s21 = scalar_lea.vmem %s1718_s0, %s999_s22  ;;  %v519_v29 = vld [vmem:[%s1698_s5 + $0x38] sm:$0xff]  ;;  %v518_v30 = vld [vmem:[%s1698_s5 + $0x30] sm:$0xff]  ;;  %s1167_s20 = sshll.u32 %s1311_s16, 4  ;;  %s1168_s20 = int_to_ptr.vmem [resolvable:$false] %s1167_s20 }
  0x44   : > { %s396_s23 = scalar_lea.vmem %s1719_s1, %s999_s22  ;;  %v398_v1 = vld [vmem:[%s388_s21] sm:$0xff]  ;;  %v399_v2 = vld [vmem:[%s388_s21 + $0x8] sm:$0xff]  ;;  %v400_v6 = vld [vmem:[%s388_s21 + $0x10] sm:$0xff]  ;;  %537 = vperm.xlu1 %1128, %v515_v20   ;;  %527 = vperm.xlu0 %1127, %v513_v21   ;;  %s1169_s1 = scalar_lea.vmem %s1168_s20, 512 }
  0x45   : > { %v404_v3 = vld [vmem:[%s396_s23] sm:$0xff]  ;;  %v402_v4 = vpack.c.bf16 %v399_v2, %v398_v1  ;;  %v405_v5 = vld [vmem:[%s396_s23 + $0x8] sm:$0xff]  ;;  %v401_v7 = vld [vmem:[%s388_s21 + $0x18] sm:$0xff]  ;;  %s1573_s21 = scalar_lea.sflag [#allocation4], %s1720_s30 }
  0x46   : > { %v408_v8 = vpack.c.bf16 %v405_v5, %v404_v3  ;;  %v403_v9 = vpack.c.bf16 %v401_v7, %v400_v6  ;;  %v406_v10 = vld [vmem:[%s396_s23 + $0x10] sm:$0xff]  ;;  %v407_v11 = vld [vmem:[%s396_s23 + $0x18] sm:$0xff]  ;;  %s1706_s23 = sand.u32 1, %s1289_s28  }
  0x47   : > { %1026 = vmatprep.subr.bf16.mxu0 %v402_v4  ;;  %v409_v12 = vpack.c.bf16 %v407_v11, %v406_v10  ;;  %s1521_s24 = sshll.u32 %s1706_s23, 4  ;;  %s1563_s23 = scalar_lea.hbm %s1700_s7, %s1534_s25 }
  0x48   : > { %1034 = vmatprep.subr.bf16.mxu1 %v408_v8  ;;  %1027 = vmatpush3.bf16.msra.mxu0 %v402_v4  ;;  %s1526_s26 = scalar_lea.vmem [#allocation5], %s1521_s24  ;;  %s1530_s12 = scalar_lea.vmem [#allocation6], %s1521_s24 }
  0x49   : > { %1035 = vmatpush3.bf16.msra.mxu1 %v408_v8  ;;  %1028 = vmatprep.subr.bf16.mxu0 %v403_v9  ;;  %s743_s14 = sshll.u32 %s1526_s26, 4  ;;  %s760_s22 = sshll.u32 %s1530_s12, 4  ;;  %s1536_s14 = int_to_ptr.vmem [resolvable:$true] %s743_s14  ;;  %s1543_s22 = int_to_ptr.vmem [resolvable:$true] %s760_s22 }
  0x4a   : > { %1036 = vmatprep.subr.bf16.mxu1 %v409_v12  ;;  %425 = vperm.xlu1 %1128, %v415_v22   ;;  %s1163_s0 = scalar_lea.vmem %s1536_s14, 256  ;;  %p1170_p3 = scmp.lt.s32.totalorder %s1536_s14, %s1168_s20 }
  0x4b   : > { %420 = vperm.xlu0 %1127, %v414_v23   ;;  %p1164_p8 = scmp.ne.s32.totalorder %s1536_s14, %s1163_s0  ;;  %p1171_p5 = scmp.lt.s32.totalorder %s1169_s1, %s1163_s0 }
  0x4c   : > { %1029 = vmatpush3.bf16.msra.mxu0 %v403_v9 }
  0x4d   : > { %1037 = vmatpush3.bf16.msra.mxu1 %v409_v12  ;;  %p1165_p11 = pnand %p1164_p8, %p1721_p10  ;;  %p1172_p6 = por %p1171_p5, %p1170_p3 }
  0x4e   : > { %435 = vperm.xlu1 %1128, %v417_v25  }
  0x4f   : > { %1031 = vmatmul.mubr.msk.bf16.vlgmr.msra.gmra.mrb[0].mxu0 %vm448_vm0, %v1131_v15  ;;  %430 = vperm.xlu0 %1127, %v416_v26   ;;  %p1166_p13 = pneg %p1165_p11 }
  0x50   : > { %1039 = vmatmul.mubr.msk.bf16.vlgmr.msra.gmra.mrb[0].mxu1 %vm448_vm0, %v1132_v16 }
  0x51   : > { %1042 = vmatprep.mubr.msk.bf16.mxu1 %vm448_vm0, %v1133_v18  ;;  %p1173_p7 = pnand %p1172_p6, %p1166_p13 }
  0x52   : > { %547 = vperm.xlu1 %1128, %v517_v27  }
  0x53   : > { %542 = vperm.xlu0 %1127, %v516_v28  }
  0x56   : > { %557 = vperm.xlu1 %1128, %v519_v29  }
  0x57   : > { %552 = vperm.xlu0 %1127, %v518_v30  }
  0x58   : > { %1043 = vmatmul.mubr.msk.bf16.gmra.mrb[4].mxu1 %vm448_vm0, %v1134_v24 }
  0xbf   : > { %v523_v31 = vpop.permute.xlu0 %522  ;;  %v533_v32 = vpop.permute.xlu1 %532 }
  0xc3   : > { %v528_v33 = vpop.permute.xlu0 %527  ;;  %v538_v34 = vpop.permute.xlu1 %537 }
  0xc9   : > { %v426_v36 = vpop.permute.xlu1 %425 }
  0xca   : > { %v421_v35 = vpop.permute.xlu0 %420 }
  0xcd   : > { %v436_v38 = vpop.permute.xlu1 %435 }
  0xce   : > { %v431_v37 = vpop.permute.xlu0 %430 }
  0xd1   : > { %v1539_v58 = vpop.permute.xlu1 %547 }
  0xd2   : > { %v1523_v39 = vpop.permute.xlu0 %542 }
  0xd6   : > { %v553_v1 = vpop.permute.xlu0 %552 }
 0x122   : > { %v1032_v40 = vpop.f32.mrb[0].mxu0 }
 0x123   : > { %v498_v41 = vadd.f32 %v1032_v40, %v431_v37  ;;  %v1040_v42 = vpop.f32.mrb[0].mxu1  ;;  %v489_v43 = vpop.f32.mrb[1].mxu0 }
 0x124   : > { %v635_v44 = vadd.f32 %v1040_v42, %v533_v32  ;;  %v490_v45 = vadd.f32 %v489_v43, %v421_v35  ;;  %v626_v46 = vpop.f32.mrb[1].mxu1  ;;  %v1033_v47 = vpop.f32.mrb[2].mxu0 }
 0x125   : > { %v1003_v48 = vpack.c.bf16 %v498_v41, %v498_v41  ;;  %v627_v49 = vadd.f32 %v626_v46, %v523_v31  ;;  %v501_v50 = vadd.f32 %v1033_v47, %v436_v38  ;;  %v1041_v51 = vpop.f32.mrb[2].mxu1  ;;  %v492_v52 = vpop.f32.mrb[3].mxu0 }
 0x126   : > { %v1007_v53 = vpack.c.bf16 %v635_v44, %v635_v44  ;;  %v1001_v54 = vpack.c.bf16 %v490_v45, %v490_v45  ;;  %v638_v55 = vadd.f32 %v1041_v51, %v538_v34  ;;  %v493_v56 = vadd.f32 %v492_v52, %v426_v36  ;;  %v629_v57 = vpop.f32.mrb[3].mxu1 }
 0x127   : > { %676 = vst.msk [vmem:[%s1526_s26 + $0x8] sm:$0xf] %vm673_vm1, %v1003_v48  ;;  %v1005_v59 = vpack.c.bf16 %v627_v49, %v627_v49  ;;  %v1004_v60 = vpack.c.bf16 %v501_v50, %v501_v50  ;;  %v630_v61 = vadd.f32 %v629_v57, %v528_v33 }
 0x128   : > { %696 = vst.msk [vmem:[%s1530_s12 + $0x8] sm:$0xf] %vm673_vm1, %v1007_v53  ;;  %674 = vst.msk [vmem:[%s1526_s26] sm:$0xf] %vm673_vm1, %v1001_v54  ;;  %v1008_v62 = vpack.c.bf16 %v638_v55, %v638_v55  ;;  %v1002_v63 = vpack.c.bf16 %v493_v56, %v493_v56 }
 0x129   : > { %694 = vst.msk [vmem:[%s1530_s12] sm:$0xf] %vm673_vm1, %v1005_v59  ;;  %677 = vst.msk [vmem:[%s1526_s26 + $0xc] sm:$0xf] %vm673_vm1, %v1004_v60  ;;  %v1006_v0 = vpack.c.bf16 %v630_v61, %v630_v61 }
 0x12a   : > { %697 = vst.msk [vmem:[%s1530_s12 + $0xc] sm:$0xf] %vm673_vm1, %v1008_v62  ;;  %675 = vst.msk [vmem:[%s1526_s26 + $0x4] sm:$0xf] %vm673_vm1, %v1002_v63 }
 0x12b   : > { %695 = vst.msk [vmem:[%s1530_s12 + $0x4] sm:$0xf] %vm673_vm1, %v1006_v0  ;;  %v1044_v2 = vpop.f32.mrb[4].mxu1 }
 0x12c   : > { %1176 = shalt.err (!%p1173_p7)
}
 0x12d   : > { %s1177_s26 = scalar_lea.hbm %s1553_s19, 256  ;;  %s1181_s16 = scalar_lea.hbm %s1699_s6, 512 }
 0x12e   : > { %p1178_p9 = scmp.ne.s32.totalorder %s1553_s19, %s1177_s26  ;;  %p1182_p2 = scmp.lt.u32.totalorder %s1553_s19, %s1699_s6 }
 0x12f   : > { %p1183_p1 = scmp.lt.u32.totalorder %s1181_s16, %s1177_s26  ;;  %p1185_p8 = scmp.lt.u32.totalorder %s1177_s26, %s1553_s19 }
 0x130   : > { %p1179_p12 = pnand %p1178_p9, %p1721_p10 }
 0x131   : > { %p1184_p4 = por %p1183_p1, %p1182_p2 }
 0x132   : > { %p1180_p0 = pneg %p1179_p12 }
 0x133   : > { %p1186_p11 = por %p1185_p8, %p1184_p4 }
 0x135   : > { %p1187_p13 = pnand %p1186_p11, %p1180_p0 }
 0x137   : > { %1190 = shalt.err (!%p1187_p13)
}
 0x138   : > { %s1312_s0 = smov 64   ;;  %s1313_s1 = smov 4   ;;  %v651_v3 = vadd.f32 %v1044_v2, %v553_v1  ;;  %v642_v4 = vpop.f32.mrb[5].mxu1 }
 0x139   : > { %1050 = dma.vmem_to_hbm [thread:$0]  (%p1721_p10), %s1536_s14, 256, %s1553_s19, %s1573_s21, %s1312_s0, %s1312_s0, %s1313_s1  }
 0x13a   : > { %s1722_s2 = sand.u32 1, %s1392_s11   ;;  %s1191_s12 = scalar_lea.vmem %s1543_s22, 256 }
 0x13b   : > { %s1602_s26 = scalar_lea.sflag [#allocation7], %s1722_s2  ;;  %p1192_p3 = scmp.ne.s32.totalorder %s1543_s22, %s1191_s12 }
 0x13c   : > { %s1314_s30 = smov [#allocation6]  }
 0x13d   : > { %p1193_p5 = pnand %p1192_p3, %p1721_p10  ;;  %s1195_s16 = sshll.u32 %s1314_s30, 4  ;;  %s1196_s16 = int_to_ptr.vmem [resolvable:$false] %s1195_s16 }
 0x13e   : > { %s1197_s20 = scalar_lea.vmem %s1196_s16, 512  ;;  %p1198_p7 = scmp.lt.s32.totalorder %s1543_s22, %s1196_s16 }
 0x13f   : > { %p1194_p6 = pneg %p1193_p5  ;;  %p1199_p9 = scmp.lt.s32.totalorder %s1197_s20, %s1191_s12 }
 0x141   : > { %p1200_p12 = por %p1199_p9, %p1198_p7 }
 0x143   : > { %p1201_p0 = pnand %p1200_p12, %p1194_p6 }
 0x145   : > { %1204 = shalt.err (!%p1201_p0)
}
 0x146   : > { %s1205_s11 = scalar_lea.hbm %s1563_s23, 256  ;;  %s1209_s21 = scalar_lea.hbm %s1700_s7, 512 }
 0x147   : > { %p1206_p2 = scmp.ne.s32.totalorder %s1563_s23, %s1205_s11  ;;  %p1210_p8 = scmp.lt.u32.totalorder %s1563_s23, %s1700_s7 }
 0x148   : > { %p1211_p11 = scmp.lt.u32.totalorder %s1209_s21, %s1205_s11  ;;  %p1213_p3 = scmp.lt.u32.totalorder %s1205_s11, %s1563_s23 }
 0x149   : > { %p1207_p1 = pnand %p1206_p2, %p1721_p10 }
 0x14a   : > { %p1212_p13 = por %p1211_p11, %p1210_p8 }
 0x14b   : > { %p1208_p4 = pneg %p1207_p1 }
 0x14c   : > { %p1214_p5 = por %p1213_p3, %p1212_p13 }
 0x14e   : > { %p1215_p6 = pnand %p1214_p5, %p1208_p4 }
 0x150   : > { %1218 = shalt.err (!%p1215_p6)
}
 0x151   : > { %1051 = dma.vmem_to_hbm [thread:$0]  (%p1721_p10), %s1543_s22, 256, %s1563_s23, %s1602_s26, %s1312_s0, %s1312_s0, %s1313_s1   ;;  %v558_v5 = vpop.permute.xlu1 %557  ;;  %v643_v6 = vadd.f32 %v642_v4, %v1523_v39  ;;  %v1045_v7 = vpop.f32.mrb[6].mxu1  ;;  %v1011_v8 = vpack.c.bf16 %v651_v3, %v651_v3 }
 0x152   : > { %s380_s12 = scalar_lea.vmem [#allocation8], %s1521_s24  ;;  %v654_v9 = vadd.f32 %v1045_v7, %v558_v5  ;;  %v645_v10 = vpop.f32.mrb[7].mxu1  ;;  %s1640_s22 = scalar_lea.hbm %s1701_s8, %s1534_s25 }
 0x153   : > { %s777_s16 = sshll.u32 %s380_s12, 4  ;;  %v1009_v11 = vpack.c.bf16 %v643_v6, %v643_v6  ;;  %v646_v12 = vadd.f32 %v645_v10, %v1539_v58  ;;  %716 = vst.msk [vmem:[%s380_s12 + $0x8] sm:$0xf] %vm673_vm1, %v1011_v8  ;;  %s1315_s11 = smov [#allocation8]   ;;  %s1633_s16 = int_to_ptr.vmem [resolvable:$true] %s777_s16 }
 0x154   : > { %v1012_v13 = vpack.c.bf16 %v654_v9, %v654_v9  ;;  %s1219_s20 = scalar_lea.vmem %s1633_s16, 256  ;;  %s1223_s14 = sshll.u32 %s1315_s11, 4  ;;  %s1224_s14 = int_to_ptr.vmem [resolvable:$false] %s1223_s14 }
 0x155   : > { %714 = vst.msk [vmem:[%s380_s12] sm:$0xf] %vm673_vm1, %v1009_v11  ;;  %v1010_v14 = vpack.c.bf16 %v646_v12, %v646_v12  ;;  %p1220_p7 = scmp.ne.s32.totalorder %s1633_s16, %s1219_s20  ;;  %s1225_s19 = scalar_lea.vmem %s1224_s14, 512 }
 0x156   : > { %717 = vst.msk [vmem:[%s380_s12 + $0xc] sm:$0xf] %vm673_vm1, %v1012_v13  ;;  %p1226_p0 = scmp.lt.s32.totalorder %s1633_s16, %s1224_s14  ;;  %p1227_p2 = scmp.lt.s32.totalorder %s1225_s19, %s1219_s20 }
 0x157   : > { %715 = vst.msk [vmem:[%s380_s12 + $0x4] sm:$0xf] %vm673_vm1, %v1010_v14  ;;  %p1221_p9 = pnand %p1220_p7, %p1721_p10 }
 0x158   : > { %p1228_p1 = por %p1227_p2, %p1226_p0 }
 0x159   : > { %p1222_p12 = pneg %p1221_p9 }
 0x15b   : > { %p1229_p4 = pnand %p1228_p1, %p1222_p12 }
 0x15d   : > { %1232 = shalt.err (!%p1229_p4)
}
 0x15e   : > { %s1233_s25 = scalar_lea.hbm %s1640_s22, 256  ;;  %s1237_s30 = scalar_lea.hbm %s1701_s8, 512 }
 0x15f   : > { %p1234_p8 = scmp.ne.s32.totalorder %s1640_s22, %s1233_s25  ;;  %p1238_p3 = scmp.lt.u32.totalorder %s1640_s22, %s1701_s8 }
 0x160   : > { %p1239_p5 = scmp.lt.u32.totalorder %s1237_s30, %s1233_s25  ;;  %p1241_p7 = scmp.lt.u32.totalorder %s1233_s25, %s1640_s22 }
 0x161   : > { %p1235_p11 = pnand %p1234_p8, %p1721_p10 }
 0x162   : > { %p1240_p6 = por %p1239_p5, %p1238_p3 }
 0x163   : > { %p1236_p13 = pneg %p1235_p11 }
 0x164   : > { %p1242_p9 = por %p1241_p7, %p1240_p6 }
 0x166   : > { %p1243_p12 = pnand %p1242_p9, %p1236_p13 }
 0x168   : > { %1246 = shalt.err (!%p1243_p12)
}
 0x169   : > { %1052 = dma.vmem_to_hbm [thread:$0]  (%p1721_p10), %s1633_s16, 256, %s1640_s22, %s1602_s26, %s1312_s0, %s1312_s0, %s1313_s1  }
 0x16a PF: > { %p1072_p0 = scmp.ge.s32.totalorder %s1305_s10, 2  ;;  %s792_s24 = sand.u32 1, %s1285_s27  }
 0x16b   : > { %p1723_p2 = scmp.ne.s32.totalorder %s1711_s17, 0  ;;  %s793_s20 = scalar_lea.sflag [#allocation4], %s792_s24 }
 0x16d   : > { %p1061_p1 = pnand %p1072_p0, %p1723_p2 }
 0x16f   : > { %1276 = dma.done.wait (!%p1061_p1), %s793_s20, 256  }
 0x170   : > { %1278 = vsyncadd (!%p1061_p1), %s793_s20, 4294967040  ;;  %s1724_s15 = sadd.s32 4294967294, %s1305_s10  }
 0x171   : > { %s801_s11 = sand.u32 1, %s1724_s15  }
 0x172   : > { %s802_s14 = scalar_lea.sflag [#allocation7], %s801_s11 }
 0x173   : > { %1280 = dma.done.wait (!%p1061_p1), %s802_s14, 512  }
 0x174   : > { %1282 = vsyncadd (!%p1061_p1), %s802_s14, 4294966784  ;;  %s26_s10 = sadd.s32 1, %s1305_s10   ;;  %s1725_s27 = smov %s1289_s28 }
 0x175   : > { %p23_p10 = scmp.ge.s32.totalorder %s26_s10, 4   ;;  %s1726_s28 = smov %s1293_s29 }
 0x176   : > { %s1727_s29 = smov %s1419_s18  ;;  %s1728_s30 = smov %s1301_s9 }
 0x177   : > { %s1729_s9 = smov %s1731_s13  ;;  %25 = sbr.rel (!%p23_p10) target bundleno = 11 (0xb), region = 119 }
 0x17e   :  { %816 = vsyncpa [#allocation3], 1 }
 0x17f   :  { %818 = vsyncpa [#allocation3 + $0x1], 1 }
 0x180   :  { %819 = vsyncpa [#allocation4], 1 }
 0x181   :  { %821 = vsyncpa [#allocation4 + $0x1], 1 }
 0x182   :  { %822 = vsyncpa [#allocation7], 1 }
 0x183   :  { %824 = vsyncpa [#allocation7 + $0x1], 1 }

</bundles_post_ra>
